<compile_context>
chip_gen: v7x
topology: tpu7x:2x2x1
jax: 0.10.0
libtpu: 0.0.40
codegen_flags: <defaults>
</compile_context>

<pallas_src>
import numpy as np
import jax
import jax.numpy as jnp
from jax.experimental import pallas as pl
from jax.experimental.pallas import tpu as pltpu


def _offset_coeffs(kernel_sizes):
    """Static per-offset weights for the fused multi-kernel moving average.

    coeffs[d + max_front] is the weight applied to x[clip(t + d, 0, L-1)] when
    computing moving_mean[t]; it already folds in the 1/K and 1/N factors.
    """
    n_ends = [(k - 1) // 2 for k in kernel_sizes]
    n_fronts = [k - 1 - ne for k, ne in zip(kernel_sizes, n_ends)]
    max_front = max(n_fronts)
    max_end = max(n_ends)
    num = len(kernel_sizes)
    coeffs = [0.0] * (max_front + max_end + 1)
    for k, nf, ne in zip(kernel_sizes, n_fronts, n_ends):
        for d in range(-nf, ne + 1):
            coeffs[d + max_front] += 1.0 / (float(k) * float(num))
    return tuple(coeffs), max_front, max_end


def _weight_matrix(L, kernel_sizes):
    """Constant banded (L, L) matrix with replication padding folded in, so
    moving_mean = W @ x along the time axis."""
    coeffs, max_front, _ = _offset_coeffs(kernel_sizes)
    w = np.zeros((L, L), np.float32)
    for t in range(L):
        for idx, c in enumerate(coeffs):
            s = min(max(t + idx - max_front, 0), L - 1)
            w[t, s] += c
    return jnp.asarray(w)


def _choose_c_tile(C_pad, L, itemsize, B):
    """Lane tile (128-multiple dividing C_pad) keeping the per-step VMEM
    footprint (resident W + double-buffered x + two double-buffered outputs)
    under ~24 MiB while preserving enough grid steps for pipelining and for
    both v7x TensorCores."""
    budget = 24 * 1024 * 1024
    w_bytes = 2 * L * L * 4  # count W twice to be conservative about buffering
    cands = [c for c in (512, 256, 128) if C_pad % c == 0] or [C_pad]
    min_steps = min(8, B * (C_pad // cands[-1]))
    for tc in cands:
        steps = B * (C_pad // tc)
        vmem = w_bytes + 6 * L * tc * itemsize
        if vmem <= budget and steps >= min_steps:
            return tc
    return cands[-1]


def _series_decomp_kernel(w_ref, x_ref, sea_ref, mean_ref):
    # One MXU matmul per (batch, lane-tile) grid step: mean = W @ x.
    mean = jnp.dot(w_ref[...], x_ref[0].astype(jnp.float32),
                   precision=jax.lax.Precision.HIGHEST,
                   preferred_element_type=jnp.float32)
    mean_ref[0] = mean.astype(mean_ref.dtype)
    # Residual: re-read x_ref (cheap vld) rather than holding a second live tile.
    sea_ref[0] = (x_ref[0].astype(jnp.float32) - mean).astype(sea_ref.dtype)


def series_decomp_multi(x, kernel_sizes):
    """(sea, moving_mean) == series_decomp_multi(kernel_size).forward(x); x: (B, L, C)."""
    kernel_sizes = tuple(int(k) for k in kernel_sizes)
    assert len(kernel_sizes) >= 1 and min(kernel_sizes) >= 1
    B, L, C = x.shape

    w = _weight_matrix(L, kernel_sizes)

    # Lane-dense layout: pad channels to a multiple of 128 so every store in
    # the kernel is an unmasked full-lane vst (pad/slice are one-time XLA ops).
    C_pad = -(-C // 128) * 128
    x_in = x if C_pad == C else jnp.pad(x, ((0, 0), (0, 0), (0, C_pad - C)))

    itemsize = jnp.dtype(x.dtype).itemsize
    tc = _choose_c_tile(C_pad, L, itemsize, B)
    num_ct = C_pad // tc

    sea, mean = pl.pallas_call(
        _series_decomp_kernel,
        out_shape=(
            jax.ShapeDtypeStruct((B, L, C_pad), x.dtype),
            jax.ShapeDtypeStruct((B, L, C_pad), x.dtype),
        ),
        grid=(B, num_ct),
        in_specs=[
            pl.BlockSpec((L, L), lambda b, c: (0, 0)),         # W: VMEM-resident
            pl.BlockSpec((1, L, tc), lambda b, c: (b, 0, c)),  # x tile
        ],
        out_specs=(
            pl.BlockSpec((1, L, tc), lambda b, c: (b, 0, c)),
            pl.BlockSpec((1, L, tc), lambda b, c: (b, 0, c)),
        ),
        compiler_params=pltpu.CompilerParams(
            dimension_semantics=("parallel", "parallel"),
            vmem_limit_bytes=32 * 1024 * 1024),
    )(w, x_in)

    if C_pad != C:
        sea = sea[:, :, :C]
        mean = mean[:, :, :C]
    return sea, mean


def _reference(x, kernel_sizes):
    """Pure-JAX reference reproducing the PyTorch module exactly."""
    means, res = [], []
    L = x.shape[1]
    for k in kernel_sizes:
        n_end = (k - 1) // 2
        n_front = k - 1 - n_end
        front = jnp.repeat(x[:, 0:1, :], n_front, axis=1)
        end = jnp.repeat(x[:, -1:, :], n_end, axis=1)
        xp = jnp.concatenate([front, x, end], axis=1)
        mv = jnp.stack(
            [xp[:, t:t + k, :].mean(axis=1) for t in range(L)], axis=1)
        means.append(mv)
        res.append(x - mv)
    sea = sum(res) / len(res)
    mean = sum(means) / len(means)
    return sea, mean


if __name__ == "__main__":
    key = jax.random.PRNGKey(0)
    k1, k2, k3 = jax.random.split(key, 3)

    # Case 1: small channels (padded to 128 lanes), mixed even/odd kernel sizes.
    x1 = jax.random.normal(k1, (2, 16, 32), dtype=jnp.float32)
    ks1 = (4, 8, 12)
    sea1, mean1 = jax.block_until_ready(series_decomp_multi(x1, ks1))
    sea1_r, mean1_r = _reference(x1, ks1)
    assert sea1.shape == sea1_r.shape and mean1.shape == mean1_r.shape
    assert float(jnp.max(jnp.abs(mean1 - mean1_r))) < 1e-5
    assert float(jnp.max(jnp.abs(sea1 - sea1_r))) < 1e-5

    # Case 2: wide channels exercising the 128-lane channel-tiling path.
    x2 = jax.random.normal(k2, (1, 24, 384), dtype=jnp.float32)
    ks2 = (3, 5)
    sea2, mean2 = jax.block_until_ready(series_decomp_multi(x2, ks2))
    sea2_r, mean2_r = _reference(x2, ks2)
    assert float(jnp.max(jnp.abs(mean2 - mean2_r))) < 1e-5
    assert float(jnp.max(jnp.abs(sea2 - sea2_r))) < 1e-5

    # Case 3: tiny channel count (C=7, a typical MTCMD feature dim).
    x3 = jax.random.normal(k3, (2, 32, 7), dtype=jnp.float32)
    ks3 = (3, 7, 11)
    sea3, mean3 = jax.block_until_ready(series_decomp_multi(x3, ks3))
    sea3_r, mean3_r = _reference(x3, ks3)
    assert float(jnp.max(jnp.abs(mean3 - mean3_r))) < 1e-5
    assert float(jnp.max(jnp.abs(sea3 - sea3_r))) < 1e-5

    print("KERNEL_OK")
</pallas_src>

<mosaic_0001>
module attributes {stable_mosaic.version = 11 : i64} {
  func.func @_series_decomp_kernel(%arg0: i32, %arg1: i32, %arg2: memref<16x16xf32, #tpu.memory_space<vmem>>, %arg3: memref<1x16x128xf32, #tpu.memory_space<vmem>>, %arg4: memref<1x16x128xf32, #tpu.memory_space<vmem>>, %arg5: memref<1x16x128xf32, #tpu.memory_space<vmem>>) attributes {dimension_semantics = [#tpu.dimension_semantics<parallel>, #tpu.dimension_semantics<parallel>], iteration_bounds = array<i64: 2, 1>, scalar_prefetch = 0 : i64, scratch_operands = 0 : i64, tpu.core_type = #tpu.core_type<tc>, window_params = [{pipeline_mode = #tpu.pipeline_mode<synchronous>, transform_indices = @transform_0, window_bounds = array<i64: 16, 16>}, {transform_indices = @transform_1, window_bounds = array<i64: 1, 16, 128>}, {transform_indices = @transform_2, window_bounds = array<i64: 1, 16, 128>}, {transform_indices = @transform_3, window_bounds = array<i64: 1, 16, 128>}]} {
    %c0 = arith.constant 0 : index
    %c0_0 = arith.constant 0 : index
    %0 = vector.load %arg2[%c0, %c0_0] : memref<16x16xf32, #tpu.memory_space<vmem>>, vector<16x16xf32>
    %c0_1 = arith.constant 0 : index
    %c0_2 = arith.constant 0 : index
    %c0_3 = arith.constant 0 : index
    %1 = vector.load %arg3[%c0_1, %c0_2, %c0_3] : memref<1x16x128xf32, #tpu.memory_space<vmem>>, vector<1x16x128xf32>
    %2 = vector.shape_cast %1 : vector<1x16x128xf32> to vector<16x128xf32>
    %cst = arith.constant dense<0.000000e+00> : vector<16x128xf32>
    %3 = tpu.matmul %0, %2, %cst {dimension_numbers = #tpu.dot_dimension_numbers<[1], [0], [0], [1], [0, 0, 1, 1], [], []>, precision = #tpu.contract_precision<fp32>} : vector<16x16xf32>, vector<16x128xf32>, vector<16x128xf32> -> vector<16x128xf32>
    %c0_4 = arith.constant 0 : index
    %c0_5 = arith.constant 0 : index
    %c0_6 = arith.constant 0 : index
    %4 = vector.load %arg5[%c0_4, %c0_5, %c0_6] : memref<1x16x128xf32, #tpu.memory_space<vmem>>, vector<1x16x128xf32>
    %5 = vector.shape_cast %4 : vector<1x16x128xf32> to vector<16x128xf32>
    %6 = vector.shape_cast %3 : vector<16x128xf32> to vector<1x16x128xf32>
    tpu.vector_store %arg5[%c0_4, %c0_5, %c0_6], %6 {strides = array<i32>} : memref<1x16x128xf32, #tpu.memory_space<vmem>>, vector<1x16x128xf32>,
    %c0_7 = arith.constant 0 : index
    %c0_8 = arith.constant 0 : index
    %c0_9 = arith.constant 0 : index
    %7 = vector.load %arg3[%c0_7, %c0_8, %c0_9] : memref<1x16x128xf32, #tpu.memory_space<vmem>>, vector<1x16x128xf32>
    %8 = vector.shape_cast %7 : vector<1x16x128xf32> to vector<16x128xf32>
    %9 = arith.subf %8, %3 : vector<16x128xf32>
    %c0_10 = arith.constant 0 : index
    %c0_11 = arith.constant 0 : index
    %c0_12 = arith.constant 0 : index
    %10 = vector.load %arg4[%c0_10, %c0_11, %c0_12] : memref<1x16x128xf32, #tpu.memory_space<vmem>>, vector<1x16x128xf32>
    %11 = vector.shape_cast %10 : vector<1x16x128xf32> to vector<16x128xf32>
    %12 = vector.shape_cast %9 : vector<16x128xf32> to vector<1x16x128xf32>
    tpu.vector_store %arg4[%c0_10, %c0_11, %c0_12], %12 {strides = array<i32>} : memref<1x16x128xf32, #tpu.memory_space<vmem>>, vector<1x16x128xf32>,
    return
  }
  func.func @transform_0(%arg0: i32, %arg1: i32) -> (i32, i32) {
    %c0_i32 = arith.constant 0 : i32
    %c0_i32_0 = arith.constant 0 : i32
    %c0_i32_1 = arith.constant 0 : i32
    return %c0_i32, %c0_i32_0 : i32, i32
  }
  func.func @transform_1(%arg0: i32, %arg1: i32) -> (i32, i32, i32) {
    %c0_i32 = arith.constant 0 : i32
    %c0_i32_0 = arith.constant 0 : i32
    return %arg0, %c0_i32, %arg1 : i32, i32, i32
  }
  func.func @transform_2(%arg0: i32, %arg1: i32) -> (i32, i32, i32) {
    %c0_i32 = arith.constant 0 : i32
    %c0_i32_0 = arith.constant 0 : i32
    return %arg0, %c0_i32, %arg1 : i32, i32, i32
  }
  func.func @transform_3(%arg0: i32, %arg1: i32) -> (i32, i32, i32) {
    %c0_i32 = arith.constant 0 : i32
    %c0_i32_0 = arith.constant 0 : i32
    return %arg0, %c0_i32, %arg1 : i32, i32, i32
  }
}

</mosaic_0001>

<bundles_post_ra>
// kernel: tpu_custom_call.1
= control target key start
LH: loop header
LB: loop body
LE: loop exit
PB: predicated region body
PF: predicated region fallthrough
CT: control target
= control target key end

     0   :  { %9 = vsyncpa [#allocation3], 0  ;;  %s1617_s0 = inlined_call_operand.hbm [shape: f32[16,16], index: 0, kind: input, shape index: {}]   ;;  %s1618_s1 = inlined_call_operand.hbm [shape: f32[2,16,128], index: 1, kind: input, shape index: {}]   ;;  %s1619_s2 = inlined_call_operand.hbm [shape: f32[2,16,128], index: 2, kind: output, shape index: {0}]   ;;  %s1620_s3 = inlined_call_operand.hbm [shape: f32[2,16,128], index: 3, kind: output, shape index: {1}]  }
   0x1   :  { %10 = vsyncpa [#allocation6], 0 }
   0x2   :  { %12 = vsyncpa [#allocation6 + $0x1], 0 }
   0x3   :  { %13 = vsyncpa [#allocation4], 0 }
   0x4   :  { %15 = vsyncpa [#allocation4 + $0x1], 0 }
   0x5   :  { %16 = vsyncpa [#allocation9], 0 }
   0x6   :  { %18 = vsyncpa [#allocation9 + $0x1], 0  ;;  %s1335_s12 = smov 0   ;;  %s1337_s13 = smov 0  }
   0x7   :  { %s1339_s14 = smov 0   ;;  %s1341_s15 = smov 0  }
   0x8   :  { %s1343_s16 = smov 0   ;;  %s1345_s17 = smov 0  }
   0x9 LB: > { %s923_s18 = sadd.s32 4294967295, %s1305_s17   ;;  %s924_s19 = sadd.s32 4294967294, %s1305_s17   ;;  %s1305_s17 = sphi %s1345_s17, %s24_s17   ;;  %s1301_s16 = sphi %s1343_s16, %s1644_s16   ;;  %s1297_s15 = sphi %s1341_s15, %s1643_s15   ;;  %s1293_s14 = sphi %s1339_s14, %s1642_s14   ;;  %s1289_s13 = sphi %s1337_s13, %s1641_s13   ;;  %s1285_s12 = sphi %s1335_s12, %s1640_s12  }
   0xa   : > { %p79_p0 = scmp.ne.s32.totalorder %s1289_s13, %s1285_s12  ;;  %p1369_p1 = scmp.eq.s32.totalorder %s923_s18, 0 }
   0xb   : > { %p1373_p2 = scmp.eq.s32.totalorder %s923_s18, 1  ;;  %p111_p3 = scmp.eq.s32.totalorder %s924_s19, 1 }
   0xc   : > { %s1625_s20 = scalar_select %p1369_p1, 1, 0 }
   0xd   : > { %s1626_s21 = scalar_select %p1373_p2, 1, 0 }
   0xe   : > { %p1379_p4 = por %p1369_p1, %p79_p0  ;;  %p925_p5 = scmp.ge.s32.totalorder %s1305_s17, 1 }
   0xf   : > { %p1384_p6 = por %p111_p3, %p79_p0  ;;  %p146_p7 = scmp.lt.s32.totalorder %s1305_s17, 3 }
  0x10   : > { %s1627_s22 = scalar_select %p1379_p4, 1, 0 }
  0x11   : > { %s1628_s23 = scalar_select %p1384_p6, 1, 0 }
  0x12   : > { %p1389_p8 = pnand %p925_p5, %p146_p7  ;;  %s1307_s25 = smov [#allocation2]  }
  0x13   : > { %s158_s26 = sshll.u32 %s1307_s25, 4  ;;  %s36_s28 = sadd.s32 1, %s1301_s16  ;;  %s159_s26 = int_to_ptr.vmem [resolvable:$true] %s158_s26 }
  0x14   : > { %s1629_s24 = scalar_select %p1389_p8, 1, 0 }
  0x15   : > { %p1057_p9 = pneg %p1389_p8  ;;  %s1129_s4 = scalar_lea.hbm %s1617_s0, 256 }
  0x16   : > { %p1130_p12 = scmp.ne.s32.totalorder %s1617_s0, %s1129_s4  ;;  %p1136_p5 = scmp.lt.u32.totalorder %s1129_s4, %s1617_s0 }
  0x17   : > { %p1398_p11 = pnand %p1057_p9, %p1369_p1 }
  0x19   : > { %p1131_p13 = pneg %p1398_p11 }
  0x1b   : > { %p1132_p0 = pnand %p1131_p13, %p1130_p12 }
  0x1d   : > { %p1133_p3 = pneg %p1132_p0 }
  0x1f   : > { %p1138_p7 = pnand %p1136_p5, %p1133_p3 }
  0x21   : > { %1141 = shalt.err (!%p1138_p7)
}
  0x22   : > { %s1142_s9 = scalar_lea.vmem %s159_s26, 256  ;;  %p1150_p4 = scmp.lt.s32.totalorder %s159_s26, %s159_s26 }
  0x23   : > { %p1143_p9 = scmp.ne.s32.totalorder %s159_s26, %s1142_s9  ;;  %p1151_p1 = scmp.lt.s32.totalorder %s1142_s9, %s1142_s9 }
  0x25   : > { %p1145_p10 = pnand %p1143_p9, %p1131_p13  ;;  %p1152_p8 = por %p1151_p1, %p1150_p4 }
  0x27   : > { %p1146_p6 = pneg %p1145_p10 }
  0x29   : > { %p1153_p2 = pnand %p1152_p8, %p1146_p6 }
  0x2b   : > { %1156 = shalt.err (!%p1153_p2)
}
  0x2c   : > { %s1308_s10 = smov 128   ;;  %s1309_s11 = smov 8  }
  0x2d   : > { %1060 = dma.hbm_to_vmem [thread:$0]  (!%p1398_p11), %s1617_s0, 256, %s159_s26, [#allocation3], %s1308_s10, %s1308_s10, %s1309_s11  }
  0x2e   : > { %p38_p1 = scmp.ge.s32.totalorder %s36_s28, 2  ;;  %s66_s25 = sadd.s32 1, %s1293_s14 }
  0x2f   : > { %p73_p2 = scmp.ne.s32.totalorder %s1293_s14, %s1289_s13  ;;  %p74_p4 = scmp.eq.s32.totalorder %s1305_s17, 0 }
  0x30   : > { %s1646_s28 = smov (%p38_p1, %s36_s28), 0  ;;  %p1632_p8 = scmp.ne.s32.totalorder %s1626_s21, 0 }
  0x31   : > { %p1428_p6 = por %p74_p4, %p73_p2  ;;  %s61_s30 = ssub.s32 %s1301_s16, %s1646_s28 }
  0x32   : > { %p1434_p10 = por %p1632_p8, %p73_p2  ;;  %p1073_p12 = scmp.lt.s32.totalorder %s1305_s17, 2 }
  0x33   : > { %p64_p11 = scmp.eq.s32.totalorder %s61_s30, 0  ;;  %s172_s26 = sand.u32 1, %s1293_s14  }
  0x34   : > { %s928_s4 = sshll.u32 %s172_s26, 4  ;;  %s944_s6 = sshll.u32 %s1301_s16, 8 }
  0x35   : > { %s1443_s5 = scalar_select %p64_p11, %s1293_s14, %s66_s25  }
  0x36   : > { %s1449_s9 = scalar_lea.hbm %s1618_s1, %s944_s6  ;;  %s176_s21 = scalar_lea.vmem [#allocation5], %s928_s4 }
  0x37   : > { %s184_s18 = sshll.u32 %s176_s21, 4  ;;  %p1455_p13 = pnand %p1073_p12, %p1428_p6  ;;  %s1451_s18 = int_to_ptr.vmem [resolvable:$true] %s184_s18 }
  0x38   : > { %s1459_s25 = scalar_lea.sflag [#allocation6], %s172_s26  ;;  %s1157_s30 = scalar_lea.hbm %s1449_s9, 256 }
  0x39   : > { %p1158_p0 = scmp.ne.s32.totalorder %s1449_s9, %s1157_s30  ;;  %p1159_p3 = pneg %p1455_p13 }
  0x3a   : > { %s1162_s29 = scalar_lea.hbm %s1618_s1, 512  ;;  %p1163_p9 = scmp.lt.u32.totalorder %s1449_s9, %s1618_s1 }
  0x3b   : > { %p1160_p5 = pnand %p1159_p3, %p1158_p0  ;;  %p1164_p1 = scmp.lt.u32.totalorder %s1162_s29, %s1157_s30 }
  0x3c   : > { %p1166_p4 = scmp.lt.u32.totalorder %s1157_s30, %s1449_s9 }
  0x3d   : > { %p1161_p7 = pneg %p1160_p5  ;;  %p1165_p2 = por %p1164_p1, %p1163_p9 }
  0x3f   : > { %p1167_p6 = por %p1166_p4, %p1165_p2 }
  0x41   : > { %p1168_p8 = pnand %p1167_p6, %p1161_p7 }
  0x43   : > { %1171 = shalt.err (!%p1168_p8)
}
  0x44   : > { %s1172_s26 = scalar_lea.vmem %s1451_s18, 256  ;;  %s1310_s21 = smov [#allocation5]  }
  0x45   : > { %p1173_p12 = scmp.ne.s32.totalorder %s1451_s18, %s1172_s26  ;;  %s1177_s4 = sshll.u32 %s1310_s21, 4  ;;  %s1178_s4 = int_to_ptr.vmem [resolvable:$false] %s1177_s4 }
  0x46   : > { %s1179_s6 = scalar_lea.vmem %s1178_s4, 512  ;;  %p1180_p5 = scmp.lt.s32.totalorder %s1451_s18, %s1178_s4 }
  0x47   : > { %p1175_p11 = pnand %p1173_p12, %p1159_p3  ;;  %p1181_p9 = scmp.lt.s32.totalorder %s1179_s6, %s1172_s26 }
  0x49   : > { %p1176_p0 = pneg %p1175_p11  ;;  %p1182_p1 = por %p1181_p9, %p1180_p5 }
  0x4b   : > { %p1183_p2 = pnand %p1182_p1, %p1176_p0 }
  0x4d   : > { %1186 = shalt.err (!%p1183_p2)
}
  0x4e   : > { %1064 = dma.hbm_to_vmem [thread:$0]  (!%p1455_p13), %s1449_s9, 256, %s1451_s18, %s1459_s25, %s1308_s10, %s1308_s10, %s1309_s11  }
  0x4f   : > { %p1635_p3 = scmp.ne.s32.totalorder %s1629_s24, 0 }
  0x50   : > { %p1636_p7 = scmp.ne.s32.totalorder (!%p1635_p3), %s1625_s20, 0 }
  0x51   : > { %196 = sbr.rel (%p1635_p3) target bundleno = 377 (0x179), region = 28 }
  0x58   : > { %1268 = dma.done.wait (%p1636_p7), [#allocation3], 256  }
  0x59   : > { %1270 = vsyncadd (%p1636_p7), [#allocation3], 4294967040  ;;  %s1497_s30 = sand.u32 1, %s1289_s13   ;;  %p1637_p13 = scmp.ne.s32.totalorder %s1627_s22, 0 }
  0x5a   : > { %s1500_s19 = sshll.u32 %s1497_s30, 4  ;;  %s203_s29 = scalar_lea.sflag [#allocation6], %s1497_s30 }
  0x5b   : > { %s206_s10 = scalar_lea.vmem [#allocation5], %s1500_s19 }
  0x5c   : > { %1272 = dma.done.wait (%p1637_p13), %s203_s29, 256  }
  0x5d   : > { %1274 = vsyncadd (%p1637_p13), %s203_s29, 4294967040  ;;  %vm238_vm0 = vcmask 130048   ;;  %v1508_v0 = vld [vmem:[%s206_s10] sm:$0xff]  ;;  %v1510_v1 = vld [vmem:[%s206_s10 + $0x8] sm:$0xff]  ;;  %s233_s20 = scalar_lea.vmem [#allocation8], %s1500_s19  ;;  %s945_s24 = sshll.u32 %s1297_s15, 8 }
  0x5e   : > { %v234_v2 = vld [vmem:[#allocation2] sm:$0xff]  ;;  %v246_v3 = vand.u32 4294901760, %v1508_v0  ;;  %v249_v4 = vand.u32 4294901760, %v1510_v1  ;;  %v235_v5 = vld [vmem:[#allocation2 + $0x8] sm:$0xff]  ;;  %s792_s22 = sshll.u32 %s233_s20, 4  ;;  %s1519_s11 = scalar_lea.vmem [#allocation7], %s1500_s19  ;;  %s1522_s22 = int_to_ptr.vmem [resolvable:$true] %s792_s22 }
  0x5f   : > { %v240_v6 = vsel %vm238_vm0, %v234_v2, 0  ;;  %v243_v7 = vsel %vm238_vm0, %v235_v5, 0  ;;  %s775_s9 = sshll.u32 %s1519_s11, 4  ;;  %s1527_s7 = scalar_lea.hbm %s1620_s3, %s945_s24  ;;  %s1530_s9 = int_to_ptr.vmem [resolvable:$true] %s775_s9 }
  0x60   : > { %v312_v8 = vand.u32 4294901760, %v240_v6  ;;  %v1013_v9 = vpack.c.bf16 %v249_v4, %v246_v3  ;;  %v322_v10 = vand.u32 4294901760, %v243_v7  ;;  %v334_v11 = vsub.f32 %v1508_v0, %v246_v3  ;;  %s1536_s26 = scalar_lea.hbm %s1619_s2, %s945_s24  ;;  %s761_s21 = scalar_lea.sflag [#allocation9], %s1497_s30 }
  0x61   : > { %v341_v12 = vsub.f32 %v1510_v1, %v249_v4  ;;  %s1187_s4 = scalar_lea.vmem %s1522_s22, 256  ;;  %s1311_s6 = smov [#allocation8]  }
  0x62   : > { %v313_v13 = vsub.f32 %v240_v6, %v312_v8  ;;  %1026 = vmatprep.subr.bf16.mxu0 %v1013_v9  ;;  %1014 = vmatprep.subr.bf16.mxu1 %v1013_v9  ;;  %v323_v14 = vsub.f32 %v243_v7, %v322_v10  ;;  %v335_v15 = vand.u32 4294901760, %v334_v11  ;;  %p1188_p4 = scmp.ne.s32.totalorder %s1522_s22, %s1187_s4  ;;  %s1191_s19 = sshll.u32 %s1311_s6, 4  ;;  %s1192_s19 = int_to_ptr.vmem [resolvable:$false] %s1191_s19 }
  0x63   : > { %v342_v16 = vand.u32 4294901760, %v341_v12  ;;  %1028 = vmatpush3.bf16.msra.mxu0 %v1013_v9  ;;  %1016 = vmatpush3.bf16.msra.mxu1 %v1013_v9  ;;  %v1021_v29 = vpack.c.bf16 %v341_v12, %v334_v11  ;;  %s1193_s29 = scalar_lea.vmem %s1192_s19, 512  ;;  %p1194_p12 = scmp.lt.s32.totalorder %s1522_s22, %s1192_s19 }
  0x64   : > { %v314_v17 = vand.u32 4294901760, %v313_v13  ;;  %v324_v18 = vand.u32 4294901760, %v323_v14  ;;  %v336_v19 = vsub.f32 %v334_v11, %v335_v15  ;;  %p1189_p6 = pnand %p1188_p4, %p1434_p10  ;;  %p1195_p11 = scmp.lt.s32.totalorder %s1193_s29, %s1187_s4 }
  0x65   : > { %v343_v20 = vsub.f32 %v341_v12, %v342_v16  ;;  %v1029_v21 = vpack.c.bf16 %v342_v16, %v335_v15 }
  0x66   : > { %996 = vmatprep.mubr.f32.mxu0 %v314_v17  ;;  %v315_v22 = vsub.f32 %v313_v13, %v314_v17  ;;  %v325_v23 = vsub.f32 %v323_v14, %v324_v18  ;;  %v337_v24 = vand.u32 4294901760, %v336_v19  ;;  %p1190_p8 = pneg %p1189_p6  ;;  %p1196_p0 = por %p1195_p11, %p1194_p12 }
  0x67   : > { %997 = vmatmul.mubr.f32.vlgmr.msra.gmra.mrb[0].mxu0 %v324_v18  ;;  %v344_v25 = vand.u32 4294901760, %v343_v20  ;;  %1030 = vmatprep.subr.bf16.mxu0 %v1029_v21 }
  0x68   : > { %v316_v26 = vand.u32 4294901760, %v315_v22  ;;  %1032 = vmatpush3.bf16.msra.mxu0 %v1029_v21  ;;  %1003 = vmatprep.mubr.f32.mxu0 %v312_v8  ;;  %v326_v27 = vand.u32 4294901760, %v325_v23  ;;  %p1197_p5 = pnand %p1196_p0, %p1190_p8 }
  0x69   : > { %v1017_v28 = vpack.c.bf16 %v344_v25, %v337_v24  ;;  %1034 = vmatprep.subr.bf16.mxu0 %v1013_v9 }
  0x6a   : > { %975 = vmatprep.mubr.f32.mxu1 %v316_v26 }
  0x6b   : > { %976 = vmatmul.mubr.f32.vlgmr.msra.gmra.mrb[0].mxu1 %v326_v27  ;;  %1018 = vmatprep.subr.bf16.mxu1 %v1017_v28 }
  0x6c   : > { %1020 = vmatpush3.bf16.msra.mxu1 %v1017_v28  ;;  %982 = vmatprep.mubr.f32.mxu1 %v312_v8 }
  0x6d   : > { %1022 = vmatprep.subr.bf16.mxu1 %v1021_v29 }
  0x6f   : > { %1004 = vmatmul.mubr.f32.vlgmr.msra.gmra.mrb[0].mxu0 %v322_v10 }
  0x70   : > { %1036 = vmatpush3.bf16.msra.mxu0 %v1013_v9  ;;  %1010 = vmatprep.mubr.f32.mxu0 %v312_v8 }
  0x73   : > { %983 = vmatmul.mubr.f32.vlgmr.msra.gmra.mrb[0].mxu1 %v322_v10 }
  0x74   : > { %1024 = vmatpush3.bf16.msra.mxu1 %v1021_v29  ;;  %989 = vmatprep.mubr.f32.mxu1 %v313_v13 }
  0x77   : > { %1011 = vmatmul.mubr.f32.vlgmr.msra.gmra.mrb[0].mxu0 %v322_v10 }
  0x7b   : > { %990 = vmatmul.mubr.f32.vlgmr.msra.gmra.mrb[0].mxu1 %v323_v14 }
 0x14a   : > { %v1012_v30 = vpop.f32.mrb[0].mxu0 }
 0x14b   : > { %v737_v31 = vpop.f32.mrb[1].mxu0 }
 0x14e   : > { %v991_v32 = vpop.f32.mrb[0].mxu1 }
 0x14f   : > { %v1037_v33 = vadd.f32 %v1012_v30, %v991_v32  ;;  %v491_v34 = vpop.f32.mrb[1].mxu1 }
 0x150   : > { %v1038_v35 = vadd.f32 %v737_v31, %v491_v34 }
 0x151   : > { %748 = vst [vmem:[%s233_s20 + $0x8] sm:$0xff] %v1037_v33  ;;  %v752_v36 = vsub.f32 %v1510_v1, %v1037_v33 }
 0x152   : > { %747 = vst [vmem:[%s233_s20] sm:$0xff] %v1038_v35  ;;  %v751_v37 = vsub.f32 %v1508_v0, %v1038_v35 }
 0x153   : > { %754 = vst [vmem:[%s1519_s11 + $0x8] sm:$0xff] %v752_v36 }
 0x154   : > { %1200 = shalt.err (!%p1197_p5)
}
 0x155   : > { %s1201_s10 = scalar_lea.hbm %s1527_s7, 256  ;;  %s1205_s18 = scalar_lea.hbm %s1620_s3, 512 }
 0x156   : > { %p1202_p9 = scmp.ne.s32.totalorder %s1527_s7, %s1201_s10  ;;  %p1206_p3 = scmp.lt.u32.totalorder %s1527_s7, %s1620_s3 }
 0x157   : > { %p1207_p7 = scmp.lt.u32.totalorder %s1205_s18, %s1201_s10  ;;  %p1209_p4 = scmp.lt.u32.totalorder %s1201_s10, %s1527_s7 }
 0x158   : > { %p1203_p1 = pnand %p1202_p9, %p1434_p10 }
 0x159   : > { %p1208_p13 = por %p1207_p7, %p1206_p3 }
 0x15a   : > { %p1204_p2 = pneg %p1203_p1 }
 0x15b   : > { %p1210_p6 = por %p1209_p4, %p1208_p13 }
 0x15d   : > { %p1211_p8 = pnand %p1210_p6, %p1204_p2 }
 0x15f   : > { %1214 = shalt.err (!%p1211_p8)
}
 0x160   : > { %s1312_s8 = smov 128   ;;  %s1313_s4 = smov 8   ;;  %753 = vst [vmem:[%s1519_s11] sm:$0xff] %v751_v37 }
 0x161   : > { %1054 = dma.vmem_to_hbm [thread:$0]  (%p1434_p10), %s1522_s22, 256, %s1527_s7, %s761_s21, %s1312_s8, %s1312_s8, %s1313_s4  }
 0x162   : > { %s756_s6 = scalar_lea.sflag [#allocation4], %s1497_s30  ;;  %s1215_s19 = scalar_lea.vmem %s1530_s9, 256 }
 0x163   : > { %p1216_p12 = scmp.ne.s32.totalorder %s1530_s9, %s1215_s19  ;;  %s1314_s29 = smov [#allocation7]  }
 0x164   : > { %s1219_s10 = sshll.u32 %s1314_s29, 4  ;;  %s1220_s10 = int_to_ptr.vmem [resolvable:$false] %s1219_s10 }
 0x165   : > { %p1217_p11 = pnand %p1216_p12, %p1434_p10  ;;  %s1221_s20 = scalar_lea.vmem %s1220_s10, 512 }
 0x166   : > { %p1222_p5 = scmp.lt.s32.totalorder %s1530_s9, %s1220_s10  ;;  %p1223_p9 = scmp.lt.s32.totalorder %s1221_s20, %s1215_s19 }
 0x167   : > { %p1218_p0 = pneg %p1217_p11 }
 0x168   : > { %p1224_p1 = por %p1223_p9, %p1222_p5 }
 0x16a   : > { %p1225_p2 = pnand %p1224_p1, %p1218_p0 }
 0x16c   : > { %1228 = shalt.err (!%p1225_p2)
}
 0x16d   : > { %s1229_s22 = scalar_lea.hbm %s1536_s26, 256  ;;  %s1233_s21 = scalar_lea.hbm %s1619_s2, 512 }
 0x16e   : > { %p1230_p3 = scmp.ne.s32.totalorder %s1536_s26, %s1229_s22  ;;  %p1234_p4 = scmp.lt.u32.totalorder %s1536_s26, %s1619_s2 }
 0x16f   : > { %p1235_p6 = scmp.lt.u32.totalorder %s1233_s21, %s1229_s22  ;;  %p1237_p12 = scmp.lt.u32.totalorder %s1229_s22, %s1536_s26 }
 0x170   : > { %p1231_p7 = pnand %p1230_p3, %p1434_p10 }
 0x171   : > { %p1236_p8 = por %p1235_p6, %p1234_p4 }
 0x172   : > { %p1232_p13 = pneg %p1231_p7 }
 0x173   : > { %p1238_p11 = por %p1237_p12, %p1236_p8 }
 0x175   : > { %p1239_p0 = pnand %p1238_p11, %p1232_p13 }
 0x177   : > { %1242 = shalt.err (!%p1239_p0)
}
 0x178   : > { %1053 = dma.vmem_to_hbm [thread:$0]  (%p1434_p10), %s1530_s9, 256, %s1536_s26, %s756_s6, %s1312_s8, %s1312_s8, %s1313_s4  }
 0x179 PF: > { %s807_s25 = sand.u32 1, %s1285_s12   ;;  %p1638_p5 = scmp.ne.s32.totalorder %s1628_s23, 0 }
 0x17a   : > { %p1639_p9 = scmp.ge.s32.totalorder %s1305_s17, 2  ;;  %s808_s15 = scalar_lea.sflag [#allocation4], %s807_s25 }
 0x17c   : > { %p1066_p1 = pnand %p1639_p9, %p1638_p5 }
 0x17e   : > { %1276 = dma.done.wait (!%p1066_p1), %s808_s15, 256  }
 0x17f   : > { %1278 = vsyncadd (!%p1066_p1), %s808_s15, 4294967040  ;;  %s817_s27 = scalar_lea.sflag [#allocation9], %s807_s25 }
 0x180   : > { %1280 = dma.done.wait (!%p1066_p1), %s817_s27, 256  }
 0x181   : > { %1282 = vsyncadd (!%p1066_p1), %s817_s27, 4294967040  ;;  %s24_s17 = sadd.s32 1, %s1305_s17   ;;  %s1640_s12 = smov %s1289_s13 }
 0x182   : > { %p21_p2 = scmp.ge.s32.totalorder %s24_s17, 4   ;;  %s1641_s13 = smov %s1293_s14 }
 0x183   : > { %s1642_s14 = smov %s1443_s5  ;;  %s1643_s15 = smov %s1301_s16 }
 0x184   : > { %s1644_s16 = smov %s1646_s28  ;;  %23 = sbr.rel (!%p21_p2) target bundleno = 9 (0x9), region = 95 }
 0x18b   :  { %822 = vsyncpa [#allocation3], 1 }
 0x18c   :  { %824 = vsyncpa [#allocation3 + $0x1], 1 }
 0x18d   :  { %825 = vsyncpa [#allocation6], 1 }
 0x18e   :  { %827 = vsyncpa [#allocation6 + $0x1], 1 }
 0x18f   :  { %828 = vsyncpa [#allocation4], 1 }
 0x190   :  { %830 = vsyncpa [#allocation4 + $0x1], 1 }
 0x191   :  { %831 = vsyncpa [#allocation9], 1 }
 0x192   :  { %833 = vsyncpa [#allocation9 + $0x1], 1 }

</bundles_post_ra>
